<compile_context>
chip_gen: v7x
topology: tpu7x:2x2x1
jax: 0.10.0
libtpu: 0.0.40
codegen_flags: <defaults>
</compile_context>

<pallas_src>
import functools

import jax
import jax.numpy as jnp
from jax import lax
from jax.experimental import pallas as pl
from jax.experimental.pallas import tpu as pltpu


# --------------------------------------------------------------------------
# Stage 1: SE gate  (one-shot, tiny)
# --------------------------------------------------------------------------
def se_gate_kernel(xse_ref, w1_ref, b1_ref, gate_ref):
    """gate = sigmoid(W1 @ xse + b1), all tiles are full arrays (one grid step)."""
    logits = jnp.dot(w1_ref[...], xse_ref[...],
                     preferred_element_type=jnp.float32) + b1_ref[...]
    gate_ref[...] = jax.nn.sigmoid(logits)


# --------------------------------------------------------------------------
# Stage 2: out[j] += W2[j, k] @ (gate[k] * x[k])
# --------------------------------------------------------------------------
def se_matmul_kernel(gate_ref, x_ref, w2_ref, o_ref, *, k_tile, num_k, rem):
    """One (j, k) grid step.

    gate_ref : (tk, 1)   per-channel gate slice (compute dtype)
    x_ref    : (tk, HW)  main activation slice, channels on sublane
    w2_ref   : (tj, tk)  conv2d98 weight tile, consumed exactly as stored
    o_ref    : (tj, HW)  resident f32 accumulator (indexed by j only)
    """
    k = pl.program_id(1)

    @pl.when(k == 0)
    def _init():
        o_ref[...] = jnp.zeros_like(o_ref)

    y = gate_ref[...] * x_ref[...]                         # (tk, HW)

    def accumulate(w2_tile, y_tile):
        # Keep the fused "+= dot" form so Mosaic can accumulate in the MXU
        # result buffer (v7x MRB) instead of a separate VMEM read-modify-write.
        o_ref[...] += jnp.dot(w2_tile, y_tile, preferred_element_type=jnp.float32)

    if rem == k_tile:
        # C2 divisible by tk: no tail handling anywhere.
        accumulate(w2_ref[...], y)
    else:
        is_last = k == (num_k - 1)

        @pl.when(jnp.logical_not(is_last))
        def _full_tile():
            accumulate(w2_ref[...], y)

        @pl.when(is_last)
        def _tail_tile():
            # Only `rem` of the k_tile input channels are in-bounds here; the
            # remainder of the block is unspecified padding.  Zero the padded
            # rows of y AND the padded columns of W2 so NaN/Inf garbage cannot
            # leak into the reduction.  This runs on exactly one grid step.
            row = lax.broadcasted_iota(jnp.int32, (k_tile, 1), 0)
            col = lax.broadcasted_iota(jnp.int32, w2_ref.shape, 1)
            y_m = jnp.where(row < rem, y, 0.0)
            w2_m = jnp.where(col < rem, w2_ref[...], 0.0)
            accumulate(w2_m, y_m)


# --------------------------------------------------------------------------
# Wrapper
# --------------------------------------------------------------------------
def _num_tensorcores_per_chip():
    """2 for v7x-style megacore parts, else 1.  Any failure -> conservative 1."""
    try:
        kind = jax.devices()[0].device_kind.lower()
    except Exception:
        return 1
    return 2 if ("v7" in kind or "7x" in kind) else 1


def fused_se_conv(x306, x303, w1, b1, w2, *, tj=None, tk=None,
                  compute_dtype=jnp.bfloat16):
    """x306: (1,C1,1,1), x303: (1,C2,H,W), w1: (C2,C1), b1: (C2,), w2: (C2,C2)."""
    n, c2, h, w_sp = x303.shape
    nb, c1, _, _ = x306.shape
    assert n == 1 and nb == 1, "kernel specialized to batch=1 (as in the module)"
    assert w1.shape == (c2, c1) and b1.shape == (c2,) and w2.shape == (c2, c2)
    hw = h * w_sp

    # ---- Stage 1: SE gate (tiny one-shot pallas_call, full-array blocks) ----
    xse = x306.reshape(c1, 1)                              # (C1, 1)  pure view
    b1c = b1.reshape(c2, 1)                                # (C2, 1)  pure view
    gate = pl.pallas_call(
        se_gate_kernel,
        out_shape=jax.ShapeDtypeStruct((c2, 1), jnp.float32),
        grid=(1,),
        in_specs=[
            pl.BlockSpec((c1, 1), lambda i: (0, 0)),
            pl.BlockSpec((c2, c1), lambda i: (0, 0)),
            pl.BlockSpec((c2, 1), lambda i: (0, 0)),
        ],
        out_specs=pl.BlockSpec((c2, 1), lambda i: (0, 0)),
        compiler_params=pltpu.CompilerParams(vmem_limit_bytes=48 * 1024 * 1024),
        cost_estimate=pl.CostEstimate(
            flops=2 * c2 * c1, transcendentals=c2,
            bytes_accessed=4 * (c2 * c1 + c1 + 2 * c2)),
    )(xse, w1, b1c)

    # ---- Stage 2: main matmul over the gated activation ---------------------
    # Native layouts (pure reshape views); bf16 for the streamed operands.
    x2d = x303.reshape(c2, hw).astype(compute_dtype)       # (C2, HW)
    w2c = w2.astype(compute_dtype)                         # (C2, C2), as stored
    gatec = gate.astype(compute_dtype)                     # (C2, 1)

    # Tile selection.
    #  tk (W2 lane dim / x sublane dim): multiple of 128 or the full dim.
    #  tj (output-channel sublane dim): full dim on 1-TC chips; ~C2/2 on 2-TC.
    if tk is None:
        tk = c2 if c2 <= 1024 else 1024
    if tj is None:
        tj = c2 if _num_tensorcores_per_chip() == 1 else ((((c2 + 1) // 2) + 7) // 8) * 8
    assert tk == c2 or tk % 128 == 0, "tk must be a multiple of 128 or the full dim"
    assert tj == c2 or tj % 8 == 0, "tj must be a multiple of 8 or the full dim"

    num_j = pl.cdiv(c2, tj)
    num_k = pl.cdiv(c2, tk)
    rem = c2 - (num_k - 1) * tk                            # valid rows in last K tile

    kernel = functools.partial(se_matmul_kernel, k_tile=tk, num_k=num_k, rem=rem)

    itemsize = jnp.dtype(compute_dtype).itemsize
    flops = 2 * c2 * c2 * hw
    bytes_accessed = int(c2 * c2 * itemsize                 # W2 streamed once
                         + num_j * (c2 * hw + c2) * itemsize  # x + gate, re-read per j
                         + c2 * hw * 4)                      # f32 output writeback

    out2d = pl.pallas_call(
        kernel,
        out_shape=jax.ShapeDtypeStruct((c2, hw), jnp.float32),
        grid=(num_j, num_k),                               # reduction axis last
        in_specs=[
            pl.BlockSpec((tk, 1), lambda j, k: (k, 0)),    # gate: streamed over K
            pl.BlockSpec((tk, hw), lambda j, k: (k, 0)),   # x   : streamed over K
            # TODO(synk): add pipeline_mode=pl.Buffered(3) on W2 if xprof still
            # shows exposed DMA after the bf16 cast (VMEM headroom is ample).
            pl.BlockSpec((tj, tk), lambda j, k: (j, k)),   # W2  : streamed (dbl-buf)
        ],
        out_specs=pl.BlockSpec((tj, hw), lambda j, k: (j, 0)),  # resident accumulator
        compiler_params=pltpu.CompilerParams(
            dimension_semantics=("parallel", "arbitrary"),
            vmem_limit_bytes=48 * 1024 * 1024),
        cost_estimate=pl.CostEstimate(flops=flops, transcendentals=0,
                                      bytes_accessed=bytes_accessed),
    )(gatec, x2d, w2c)

    return out2d.reshape(1, c2, h, w_sp)                   # back to NCHW (pure reshape)


# --------------------------------------------------------------------------
# Pure-JAX reference of the PyTorch forward (1x1 convs as einsums)
# --------------------------------------------------------------------------
def reference(x306, x303, w1, b1, w2):
    p = jax.lax.Precision.HIGHEST
    x307 = jnp.einsum("oc,ncij->noij", w1, x306, precision=p) + b1[None, :, None, None]
    x308 = jax.nn.sigmoid(x307)
    x309 = x308 * x303
    x310 = jnp.einsum("oc,nchw->nohw", w2, x309, precision=p)
    return x310


if __name__ == "__main__":
    # Small shapes structurally consistent with the module (original: C1=726,
    # C2=2904, H=W=14).  C2=300 with tk=128 / tj=152 exercises BOTH tail paths
    # flagged by the review: a masked last K tile (rem=44) and a clipped last J
    # tile (4 out-of-bounds output rows), plus a real (J=2 parallel, K=3
    # reduction) grid with cross-step accumulation.
    C1, C2, H, W = 72, 300, 14, 14

    key = jax.random.PRNGKey(0)
    k1, k2, k3, k4, k5 = jax.random.split(key, 5)
    x303 = jax.random.normal(k1, (1, C2, H, W), dtype=jnp.float32)   # main activation
    x306 = jax.random.normal(k2, (1, C1, 1, 1), dtype=jnp.float32)   # squeeze input
    w1 = jax.random.normal(k3, (C2, C1), dtype=jnp.float32) * (1.0 / jnp.sqrt(C1))
    b1 = jax.random.normal(k4, (C2,), dtype=jnp.float32) * 0.1
    w2 = jax.random.normal(k5, (C2, C2), dtype=jnp.float32) * (1.0 / jnp.sqrt(C2))

    ref = reference(x306, x303, w1, b1, w2)

    # f32 compute path, explicit tiles hitting both tails (tight tolerance).
    out_f32 = jax.block_until_ready(
        fused_se_conv(x306, x303, w1, b1, w2, tj=152, tk=128,
                      compute_dtype=jnp.float32))
    assert out_f32.shape == (1, C2, H, W)
    assert jnp.allclose(out_f32, ref, atol=5e-3, rtol=5e-3), "f32 kernel mismatch"

    # bf16 compute path (the default), same tail-exercising tiles.
    out_bf16 = jax.block_until_ready(
        fused_se_conv(x306, x303, w1, b1, w2, tj=152, tk=128))
    assert out_bf16.shape == (1, C2, H, W)
    assert jnp.allclose(out_bf16, ref, atol=5e-2, rtol=5e-2), "bf16 kernel mismatch"

    # Default tile-selection path (tj/tk chosen automatically for this chip).
    out_def = jax.block_until_ready(fused_se_conv(x306, x303, w1, b1, w2))
    assert jnp.allclose(out_def, ref, atol=5e-2, rtol=5e-2), "default-tile kernel mismatch"

    print("KERNEL_OK")
</pallas_src>

<mosaic_0001>
module attributes {stable_mosaic.version = 11 : i64} {
  func.func @se_gate_kernel(%arg0: i32, %arg1: memref<72x1xf32, #tpu.memory_space<vmem>>, %arg2: memref<300x72xf32, #tpu.memory_space<vmem>>, %arg3: memref<300x1xf32, #tpu.memory_space<vmem>>, %arg4: memref<300x1xf32, #tpu.memory_space<vmem>>) attributes {dimension_semantics = [#tpu.dimension_semantics<arbitrary>], iteration_bounds = array<i64: 1>, scalar_prefetch = 0 : i64, scratch_operands = 0 : i64, tpu.core_type = #tpu.core_type<tc>, window_params = [{pipeline_mode = #tpu.pipeline_mode<synchronous>, transform_indices = @transform_0, window_bounds = array<i64: 72, 1>}, {pipeline_mode = #tpu.pipeline_mode<synchronous>, transform_indices = @transform_1, window_bounds = array<i64: 300, 72>}, {pipeline_mode = #tpu.pipeline_mode<synchronous>, transform_indices = @transform_2, window_bounds = array<i64: 300, 1>}, {pipeline_mode = #tpu.pipeline_mode<synchronous>, transform_indices = @transform_3, window_bounds = array<i64: 300, 1>}]} {
    %c0 = arith.constant 0 : index
    %c0_0 = arith.constant 0 : index
    %0 = vector.load %arg2[%c0, %c0_0] : memref<300x72xf32, #tpu.memory_space<vmem>>, vector<300x72xf32>
    %c0_1 = arith.constant 0 : index
    %c0_2 = arith.constant 0 : index
    %1 = vector.load %arg1[%c0_1, %c0_2] : memref<72x1xf32, #tpu.memory_space<vmem>>, vector<72x1xf32>
    %cst = arith.constant dense<0.000000e+00> : vector<300x1xf32>
    %2 = tpu.matmul %0, %1, %cst {dimension_numbers = #tpu.dot_dimension_numbers<[1], [0], [0], [1], [0, 0, 1, 1], [], []>} : vector<300x72xf32>, vector<72x1xf32>, vector<300x1xf32> -> vector<300x1xf32>
    %c0_3 = arith.constant 0 : index
    %c0_4 = arith.constant 0 : index
    %3 = vector.load %arg3[%c0_3, %c0_4] : memref<300x1xf32, #tpu.memory_space<vmem>>, vector<300x1xf32>
    %4 = arith.addf %2, %3 : vector<300x1xf32>
    %5 = arith.negf %4 : vector<300x1xf32>
    %6 = math.exp %5 : vector<300x1xf32>
    %cst_5 = arith.constant 1.000000e+00 : f32
    %7 = vector.broadcast %cst_5 : f32 to vector<300x1xf32>
    %8 = arith.addf %7, %6 : vector<300x1xf32>
    %9 = arith.divf %7, %8 : vector<300x1xf32>
    %c0_6 = arith.constant 0 : index
    %c0_7 = arith.constant 0 : index
    %10 = vector.load %arg4[%c0_6, %c0_7] : memref<300x1xf32, #tpu.memory_space<vmem>>, vector<300x1xf32>
    tpu.vector_store %arg4[%c0_6, %c0_7], %9 {strides = array<i32>} : memref<300x1xf32, #tpu.memory_space<vmem>>, vector<300x1xf32>,
    return
  }
  func.func @transform_0(%arg0: i32) -> (i32, i32) {
    %c0_i32 = arith.constant 0 : i32
    %c0_i32_0 = arith.constant 0 : i32
    %c0_i32_1 = arith.constant 0 : i32
    return %c0_i32, %c0_i32_0 : i32, i32
  }
  func.func @transform_1(%arg0: i32) -> (i32, i32) {
    %c0_i32 = arith.constant 0 : i32
    %c0_i32_0 = arith.constant 0 : i32
    %c0_i32_1 = arith.constant 0 : i32
    return %c0_i32, %c0_i32_0 : i32, i32
  }
  func.func @transform_2(%arg0: i32) -> (i32, i32) {
    %c0_i32 = arith.constant 0 : i32
    %c0_i32_0 = arith.constant 0 : i32
    %c0_i32_1 = arith.constant 0 : i32
    return %c0_i32, %c0_i32_0 : i32, i32
  }
  func.func @transform_3(%arg0: i32) -> (i32, i32) {
    %c0_i32 = arith.constant 0 : i32
    %c0_i32_0 = arith.constant 0 : i32
    %c0_i32_1 = arith.constant 0 : i32
    return %c0_i32, %c0_i32_0 : i32, i32
  }
}

</mosaic_0001>

<bundles_post_ra>
// kernel: tpu_custom_call.1
= control target key start
LH: loop header
LB: loop body
LE: loop exit
PB: predicated region body
PF: predicated region fallthrough
CT: control target
= control target key end

     0   :  { %vm99_vm0 = vcmask 588800   ;;  %vm697_vm1 = vcmask 7168   ;;  %vm735_vm2 = vcmask 3072   ;;  %s1632_s0 = inlined_call_operand.vmem [shape: f32[72,1], index: 0, kind: input, shape index: {}]   ;;  %s1633_s1 = inlined_call_operand.vmem [shape: f32[300,72], index: 1, kind: input, shape index: {}]   ;;  %s1634_s2 = inlined_call_operand.vmem [shape: f32[300,1], index: 2, kind: input, shape index: {}]   ;;  %s1635_s3 = inlined_call_operand.vmem [shape: f32[300,1], index: 3, kind: output, shape index: {}]  }
   0x1   :  { %v52_v0 = vld [vmem:[%s1632_s0] sm:$0xff]  ;;  %v53_v1 = vld [vmem:[%s1632_s0 + $0x8] sm:$0xff]  ;;  %v54_v2 = vld [vmem:[%s1632_s0 + $0x10] sm:$0xff] }
   0x2   :  { %v939_v3 = vpack.c.bf16 %v53_v1, %v52_v0  ;;  %v55_v4 = vld [vmem:[%s1632_s0 + $0x18] sm:$0xff]  ;;  %v56_v6 = vld [vmem:[%s1632_s0 + $0x20] sm:$0xff]  ;;  %v57_v7 = vld [vmem:[%s1632_s0 + $0x28] sm:$0xff] }
   0x3   :  { %v943_v5 = vpack.c.bf16 %v55_v4, %v54_v2  ;;  %v14_v8 = vld [vmem:[%s1633_s1] sm:$0xff]  ;;  %v947_v10 = vpack.c.bf16 %v57_v7, %v56_v6  ;;  %v58_v11 = vld [vmem:[%s1632_s0 + $0x30] sm:$0xff]  ;;  %v59_v12 = vld [vmem:[%s1632_s0 + $0x38] sm:$0xff] }
   0x4   :  { %940 = vmatprep.subr.bf16.mxu0 %v939_v3  ;;  %955 = vmatprep.subr.bf16.mxu1 %v939_v3  ;;  %v34_v9 = vld [vmem:[%s1633_s1 + $0xa0] sm:$0xff]  ;;  %v951_v13 = vpack.c.bf16 %v59_v12, %v58_v11  ;;  %v15_v15 = vld [vmem:[%s1633_s1 + $0x8] sm:$0xff]  ;;  %v16_v17 = vld [vmem:[%s1633_s1 + $0x10] sm:$0xff] }
   0x5   :  { %942 = vmatpush3.bf16.msra.mxu0 %v939_v3  ;;  %960 = vmatpush3.bf16.msra.mxu1 %v939_v3  ;;  %v60_v14 = vld [vmem:[%s1632_s0 + $0x40] sm:$0xff]  ;;  %v35_v16 = vld [vmem:[%s1633_s1 + $0xa8] sm:$0xff]  ;;  %v36_v18 = vld [vmem:[%s1633_s1 + $0xb0] sm:$0xff] }
   0x6   :  { %944 = vmatprep.subr.bf16.mxu0 %v943_v5  ;;  %956 = vmatprep.subr.bf16.mxu1 %v943_v5  ;;  %v17_v19 = vld [vmem:[%s1633_s1 + $0x18] sm:$0xff]  ;;  %v18_v21 = vld [vmem:[%s1633_s1 + $0x20] sm:$0xff]  ;;  %v19_v23 = vld [vmem:[%s1633_s1 + $0x28] sm:$0xff] }
   0x7   :  { %882 = vmatprep.mubr.msk.f32.mxu0 %vm99_vm0, %v14_v8  ;;  %912 = vmatprep.mubr.msk.f32.mxu1 %vm99_vm0, %v34_v9  ;;  %v37_v20 = vld [vmem:[%s1633_s1 + $0xb8] sm:$0xff]  ;;  %v38_v22 = vld [vmem:[%s1633_s1 + $0xc0] sm:$0xff]  ;;  %v39_v24 = vld [vmem:[%s1633_s1 + $0xc8] sm:$0xff] }
   0x8   :  { %v20_v25 = vld [vmem:[%s1633_s1 + $0x30] sm:$0xff]  ;;  %v21_v27 = vld [vmem:[%s1633_s1 + $0x38] sm:$0xff]  ;;  %v22_v29 = vld [vmem:[%s1633_s1 + $0x40] sm:$0xff] }
   0x9   :  { %946 = vmatpush3.bf16.msra.mxu0 %v943_v5  ;;  %961 = vmatpush3.bf16.msra.mxu1 %v943_v5  ;;  %v40_v26 = vld [vmem:[%s1633_s1 + $0xd0] sm:$0xff]  ;;  %v41_v28 = vld [vmem:[%s1633_s1 + $0xd8] sm:$0xff]  ;;  %v42_v30 = vld [vmem:[%s1633_s1 + $0xe0] sm:$0xff] }
   0xa   :  { %948 = vmatprep.subr.bf16.mxu0 %v947_v10  ;;  %957 = vmatprep.subr.bf16.mxu1 %v947_v10  ;;  %v23_v31 = vld [vmem:[%s1633_s1 + $0x48] sm:$0xff]  ;;  %v24_v33 = vld [vmem:[%s1633_s1 + $0x50] sm:$0xff]  ;;  %v25_v35 = vld [vmem:[%s1633_s1 + $0x58] sm:$0xff] }
   0xb   :  { %v43_v32 = vld [vmem:[%s1633_s1 + $0xe8] sm:$0xff]  ;;  %v44_v34 = vld [vmem:[%s1633_s1 + $0xf0] sm:$0xff]  ;;  %v45_v36 = vld [vmem:[%s1633_s1 + $0xf8] sm:$0xff] }
   0xc   :  { %v26_v37 = vld [vmem:[%s1633_s1 + $0x60] sm:$0xff]  ;;  %v27_v39 = vld [vmem:[%s1633_s1 + $0x68] sm:$0xff]  ;;  %v28_v41 = vld [vmem:[%s1633_s1 + $0x70] sm:$0xff] }
   0xd   :  { %950 = vmatpush3.bf16.msra.mxu0 %v947_v10  ;;  %962 = vmatpush3.bf16.msra.mxu1 %v947_v10  ;;  %v46_v38 = vld [vmem:[%s1633_s1 + $0x100] sm:$0xff]  ;;  %v47_v40 = vld [vmem:[%s1633_s1 + $0x108] sm:$0xff]  ;;  %v48_v42 = vld [vmem:[%s1633_s1 + $0x110] sm:$0xff] }
   0xe   :  { %952 = vmatprep.subr.bf16.mxu0 %v951_v13  ;;  %958 = vmatprep.subr.bf16.mxu1 %v951_v13  ;;  %v29_v43 = vld [vmem:[%s1633_s1 + $0x78] sm:$0xff]  ;;  %v30_v45 = vld [vmem:[%s1633_s1 + $0x80] sm:$0xff]  ;;  %v31_v47 = vld [vmem:[%s1633_s1 + $0x88] sm:$0xff] }
   0xf   :  { %v49_v44 = vld [vmem:[%s1633_s1 + $0x118] sm:$0xff]  ;;  %v50_v46 = vld [vmem:[%s1633_s1 + $0x120] sm:$0xff]  ;;  %v51_v48 = vld [vmem:[%s1633_s1 + $0x128] sm:$0xf] }
  0x10   :  { %v32_v49 = vld [vmem:[%s1633_s1 + $0x90] sm:$0xff]  ;;  %v33_v50 = vld [vmem:[%s1633_s1 + $0x98] sm:$0xff]  ;;  %v62_v51 = vld [vmem:[%s1634_s2 + $0x8] sm:$0xff] }
  0x11   :  { %954 = vmatpush3.bf16.msra.mxu0 %v951_v13  ;;  %963 = vmatpush3.bf16.msra.mxu1 %v951_v13  ;;  %v82_v52 = vld [vmem:[%s1634_s2 + $0xa8] sm:$0xff]  ;;  %v61_v53 = vld [vmem:[%s1634_s2] sm:$0xff]  ;;  %v64_v62 = vld [vmem:[%s1634_s2 + $0x18] sm:$0xff] }
  0x12   :  { %880 = vmatprep.subr.mxu0 %v60_v14  ;;  %959 = vmatprep.subr.mxu1 %v60_v14  ;;  %v81_v54 = vld [vmem:[%s1634_s2 + $0xa0] sm:$0xff]  ;;  %v84_v0 = vld [vmem:[%s1634_s2 + $0xb8] sm:$0xff]  ;;  %v63_v3 = vld [vmem:[%s1634_s2 + $0x10] sm:$0xff] }
  0x13   :  { %v83_v4 = vld [vmem:[%s1634_s2 + $0xb0] sm:$0xff] }
  0x15   :  { %881 = vmatpush3.msra.mxu0 %v60_v14  ;;  %964 = vmatpush3.msra.mxu1 %v60_v14  ;;  %v66_v14 = vld [vmem:[%s1634_s2 + $0x28] sm:$0xff] }
  0x16   :  { %883 = vmatmul.mubr.msk.f32.vlgmr.msra.gmra.mrb[0].mxu0 %vm99_vm0, %v15_v15  ;;  %913 = vmatmul.mubr.msk.f32.vlgmr.msra.gmra.mrb[0].mxu1 %vm99_vm0, %v35_v16  ;;  %v86_v16 = vld [vmem:[%s1634_s2 + $0xc8] sm:$0xff] }
  0x17   :  { %885 = vmatprep.mubr.msk.f32.mxu0 %vm99_vm0, %v16_v17  ;;  %915 = vmatprep.mubr.msk.f32.mxu1 %vm99_vm0, %v36_v18 }
  0x1a   :  { %886 = vmatmul.mubr.msk.f32.gmra.mrb[2].mxu0 %vm99_vm0, %v17_v19  ;;  %916 = vmatmul.mubr.msk.f32.gmra.mrb[2].mxu1 %vm99_vm0, %v37_v20  ;;  %v65_v19 = vld [vmem:[%s1634_s2 + $0x20] sm:$0xff] }
  0x1b   :  { %888 = vmatprep.mubr.msk.f32.mxu0 %vm99_vm0, %v18_v21  ;;  %918 = vmatprep.mubr.msk.f32.mxu1 %vm99_vm0, %v38_v22  ;;  %v85_v20 = vld [vmem:[%s1634_s2 + $0xc0] sm:$0xff] }
  0x1e   :  { %889 = vmatmul.mubr.msk.f32.gmra.mrb[4].mxu0 %vm99_vm0, %v19_v23  ;;  %919 = vmatmul.mubr.msk.f32.gmra.mrb[4].mxu1 %vm99_vm0, %v39_v24 }
  0x1f   :  { %891 = vmatprep.mubr.msk.f32.mxu0 %vm99_vm0, %v20_v25  ;;  %921 = vmatprep.mubr.msk.f32.mxu1 %vm99_vm0, %v40_v26 }
  0x22   :  { %892 = vmatmul.mubr.msk.f32.gmra.mrb[6].mxu0 %vm99_vm0, %v21_v27  ;;  %922 = vmatmul.mubr.msk.f32.gmra.mrb[6].mxu1 %vm99_vm0, %v41_v28 }
  0x23   :  { %894 = vmatprep.mubr.msk.f32.mxu0 %vm99_vm0, %v22_v29  ;;  %924 = vmatprep.mubr.msk.f32.mxu1 %vm99_vm0, %v42_v30  ;;  %v68_v30 = vld [vmem:[%s1634_s2 + $0x38] sm:$0xff] }
  0x26   :  { %895 = vmatmul.mubr.msk.f32.gmra.mrb[8].mxu0 %vm99_vm0, %v23_v31  ;;  %925 = vmatmul.mubr.msk.f32.gmra.mrb[8].mxu1 %vm99_vm0, %v43_v32 }
  0x27   :  { %897 = vmatprep.mubr.msk.f32.mxu0 %vm99_vm0, %v24_v33  ;;  %927 = vmatprep.mubr.msk.f32.mxu1 %vm99_vm0, %v44_v34 }
  0x2a   :  { %898 = vmatmul.mubr.msk.f32.gmra.mrb[10].mxu0 %vm99_vm0, %v25_v35  ;;  %928 = vmatmul.mubr.msk.f32.gmra.mrb[10].mxu1 %vm99_vm0, %v45_v36 }
  0x2b   :  { %900 = vmatprep.mubr.msk.f32.mxu0 %vm99_vm0, %v26_v37  ;;  %930 = vmatprep.mubr.msk.f32.mxu1 %vm99_vm0, %v46_v38 }
  0x2e   :  { %901 = vmatmul.mubr.msk.f32.gmra.mrb[12].mxu0 %vm99_vm0, %v27_v39  ;;  %931 = vmatmul.mubr.msk.f32.gmra.mrb[12].mxu1 %vm99_vm0, %v47_v40 }
  0x2f   :  { %903 = vmatprep.mubr.msk.f32.mxu0 %vm99_vm0, %v28_v41  ;;  %933 = vmatprep.mubr.msk.f32.mxu1 %vm99_vm0, %v48_v42 }
  0x32   :  { %904 = vmatmul.mubr.msk.f32.gmra.mrb[14].mxu0 %vm99_vm0, %v29_v43  ;;  %934 = vmatmul.mubr.msk.f32.gmra.mrb[14].mxu1 %vm99_vm0, %v49_v44 }
  0x33   :  { %906 = vmatprep.mubr.msk.f32.mxu0 %vm99_vm0, %v30_v45  ;;  %936 = vmatprep.mubr.msk.f32.mxu1 %vm99_vm0, %v50_v46 }
  0x36   :  { %907 = vmatmul.mubr.msk.f32.gmra.mrb[16].mxu0 %vm99_vm0, %v31_v47  ;;  %937 = vmatmul.mubr.msk.f32.gmra.mrb[16].mxu1 %vm99_vm0, %v51_v48 }
  0x37   :  { %909 = vmatprep.mubr.msk.f32.mxu0 %vm99_vm0, %v32_v49 }
  0x3a   :  { %910 = vmatmul.mubr.msk.f32.gmra.mrb[18].mxu0 %vm99_vm0, %v33_v50 }
  0xe9   :  { %v884_v55 = vpop.f32.mrb[0].mxu0  ;;  %v914_v56 = vpop.f32.mrb[0].mxu1 }
  0xea   :  { %v286_v57 = vadd.f32 %v884_v55, %v62_v51  ;;  %v280_v58 = vpop.f32.mrb[1].mxu0  ;;  %v386_v59 = vadd.f32 %v914_v56, %v82_v52  ;;  %v380_v60 = vpop.f32.mrb[1].mxu1 }
  0xeb   :  { %v281_v61 = vadd.f32 %v280_v58, %v61_v53  ;;  %v381_v63 = vadd.f32 %v380_v60, %v81_v54 }
  0xec   :  { %v780_v1 = vmul.f32 -1.442695, %v286_v57  ;;  %v800_v2 = vmul.f32 -1.442695, %v386_v59  ;;  %v67_v57 = vld [vmem:[%s1634_s2 + $0x30] sm:$0xff] }
  0xed   :  { %v779_v5 = vmul.f32 -1.442695, %v281_v61  ;;  %v887_v6 = vpop.f32.mrb[2].mxu0  ;;  %v799_v7 = vmul.f32 -1.442695, %v381_v63  ;;  %v917_v8 = vpop.f32.mrb[2].mxu1 }
  0xee   :  { %965 = vpow2.f32 %v780_v1  ;;  %v296_v9 = vadd.f32 %v887_v6, %v64_v62  ;;  %v290_v10 = vpop.f32.mrb[3].mxu0  ;;  %v396_v11 = vadd.f32 %v917_v8, %v84_v0  ;;  %v390_v12 = vpop.f32.mrb[3].mxu1  ;;  %v88_v61 = vld [vmem:[%s1634_s2 + $0xd8] sm:$0xff] }
  0xef   :  { %967 = vpow2.f32 %v779_v5  ;;  %v291_v13 = vadd.f32 %v290_v10, %v63_v3  ;;  %v391_v15 = vadd.f32 %v390_v12, %v83_v4 }
  0xf0   :  { %969 = vpow2.f32 %v800_v2  ;;  %v782_v17 = vmul.f32 -1.442695, %v296_v9  ;;  %v802_v18 = vmul.f32 -1.442695, %v396_v11  ;;  %v70_v2 = vld [vmem:[%s1634_s2 + $0x48] sm:$0xff]  ;;  %v69_v11 = vld [vmem:[%s1634_s2 + $0x40] sm:$0xff] }
  0xf1   :  { %971 = vpow2.f32 %v799_v7  ;;  %v781_v21 = vmul.f32 -1.442695, %v291_v13  ;;  %v890_v22 = vpop.f32.mrb[4].mxu0  ;;  %v801_v23 = vmul.f32 -1.442695, %v391_v15  ;;  %v920_v24 = vpop.f32.mrb[4].mxu1 }
  0xf2   :  { %973 = vpow2.f32 %v782_v17  ;;  %v306_v25 = vadd.f32 %v890_v22, %v66_v14  ;;  %v300_v26 = vpop.f32.mrb[5].mxu0  ;;  %v406_v27 = vadd.f32 %v920_v24, %v86_v16  ;;  %v400_v28 = vpop.f32.mrb[5].mxu1  ;;  %v87_v7 = vld [vmem:[%s1634_s2 + $0xd0] sm:$0xff]  ;;  %v90_v16 = vld [vmem:[%s1634_s2 + $0xe8] sm:$0xff]  ;;  %v72_v22 = vld [vmem:[%s1634_s2 + $0x58] sm:$0xff] }
  0xf3   :  { %975 = vpow2.f32 %v781_v21  ;;  %v301_v29 = vadd.f32 %v300_v26, %v65_v19  ;;  %v401_v31 = vadd.f32 %v400_v28, %v85_v20  ;;  %v89_v28 = vld [vmem:[%s1634_s2 + $0xe0] sm:$0xff] }
  0xf4   :  { %977 = vpow2.f32 %v802_v18  ;;  %v784_v32 = vmul.f32 -1.442695, %v306_v25  ;;  %v804_v33 = vmul.f32 -1.442695, %v406_v27 }
  0xf5   :  { %979 = vpow2.f32 %v801_v23  ;;  %v783_v34 = vmul.f32 -1.442695, %v301_v29  ;;  %v893_v35 = vpop.f32.mrb[6].mxu0  ;;  %v803_v36 = vmul.f32 -1.442695, %v401_v31  ;;  %v923_v37 = vpop.f32.mrb[6].mxu1 }
  0xf6   :  { %981 = vpow2.f32 %v784_v32  ;;  %v316_v38 = vadd.f32 %v893_v35, %v68_v30  ;;  %v310_v39 = vpop.f32.mrb[7].mxu0  ;;  %v410_v40 = vpop.f32.mrb[7].mxu1  ;;  %v416_v10 = vadd.f32 %v923_v37, %v88_v61 }
  0xf7   :  { %983 = vpow2.f32 %v783_v34  ;;  %v311_v6 = vadd.f32 %v310_v39, %v67_v57  ;;  %v411_v21 = vadd.f32 %v410_v40, %v87_v7 }
  0xf8   :  { %v966_v41 = vpop.eup %965  ;;  %985 = vpow2.f32 %v804_v33  ;;  %v786_v42 = vmul.f32 -1.442695, %v316_v38  ;;  %v806_v31 = vmul.f32 -1.442695, %v416_v10  ;;  %v71_v33 = vld [vmem:[%s1634_s2 + $0x50] sm:$0xff]  ;;  %v92_v38 = vld [vmem:[%s1634_s2 + $0xf8] sm:$0xff] }
  0xf9   :  { %v968_v43 = vpop.eup %967  ;;  %v584_v44 = vadd.f32 1.0, %v966_v41  ;;  %987 = vpow2.f32 %v803_v36  ;;  %v896_v45 = vpop.f32.mrb[8].mxu0  ;;  %v785_v26 = vmul.f32 -1.442695, %v311_v6 }
  0xfa   :  { %v970_v46 = vpop.eup %969  ;;  %v583_v47 = vadd.f32 1.0, %v968_v43  ;;  %989 = vpow2.f32 %v786_v42  ;;  %v320_v48 = vpop.f32.mrb[9].mxu0  ;;  %v326_v15 = vadd.f32 %v896_v45, %v70_v2  ;;  %v805_v42 = vmul.f32 -1.442695, %v411_v21 }
  0xfb   :  { %v926_v49 = vpop.f32.mrb[8].mxu1  ;;  %v972_v50 = vpop.eup %971  ;;  %991 = vrcp.f32 %v584_v44  ;;  %v604_v51 = vadd.f32 1.0, %v970_v46  ;;  %v321_v27 = vadd.f32 %v320_v48, %v69_v11  ;;  %v74_v44 = vld [vmem:[%s1634_s2 + $0x68] sm:$0xff] }
  0xfc   :  { %v1355_v52 = vpop.f32.mrb[9].mxu1  ;;  %v974_v53 = vpop.eup %973  ;;  %993 = vrcp.f32 %v583_v47  ;;  %v603_v54 = vadd.f32 1.0, %v972_v50  ;;  %v426_v32 = vadd.f32 %v926_v49, %v90_v16  ;;  %v788_v36 = vmul.f32 -1.442695, %v326_v15  ;;  %v91_v49 = vld [vmem:[%s1634_s2 + $0xf0] sm:$0xff] }
  0xfd   :  { %v976_v55 = vpop.eup %975  ;;  %995 = vrcp.f32 %v604_v51  ;;  %v586_v56 = vadd.f32 1.0, %v974_v53  ;;  %v899_v58 = vpop.f32.mrb[10].mxu0  ;;  %v421_v43 = vadd.f32 %v1355_v52, %v89_v28  ;;  %v787_v47 = vmul.f32 -1.442695, %v321_v27  ;;  %v73_v53 = vld [vmem:[%s1634_s2 + $0x60] sm:$0xff]  ;;  %v94_v27 = vld [vmem:[%s1634_s2 + $0x108] sm:$0xff] }
  0xfe   :  { %v978_v59 = vpop.eup %977  ;;  %997 = vrcp.f32 %v603_v54  ;;  %v585_v60 = vadd.f32 1.0, %v976_v55  ;;  %v1363_v62 = vpop.f32.mrb[11].mxu0  ;;  %v336_v37 = vadd.f32 %v899_v58, %v72_v22  ;;  %v808_v51 = vmul.f32 -1.442695, %v426_v32 }
  0xff   :  { %v1365_v63 = vpop.f32.mrb[10].mxu1  ;;  %v980_v0 = vpop.eup %979  ;;  %999 = vrcp.f32 %v586_v56  ;;  %v606_v1 = vadd.f32 1.0, %v978_v59  ;;  %v331_v48 = vadd.f32 %v1363_v62, %v71_v33  ;;  %v807_v62 = vmul.f32 -1.442695, %v421_v43  ;;  %v93_v33 = vld [vmem:[%s1634_s2 + $0x100] sm:$0xff] }
 0x100   :  { %v1370_v3 = vpop.f32.mrb[11].mxu1  ;;  %v982_v4 = vpop.eup %981  ;;  %1001 = vrcp.f32 %v585_v60  ;;  %v605_v5 = vadd.f32 1.0, %v980_v0  ;;  %v436_v52 = vadd.f32 %v1365_v63, %v92_v38  ;;  %v790_v57 = vmul.f32 -1.442695, %v336_v37  ;;  %v75_v38 = vld [vmem:[%s1634_s2 + $0x70] sm:$0xff] }
 0x101   :  { %v984_v8 = vpop.eup %983  ;;  %1003 = vrcp.f32 %v606_v1  ;;  %v588_v9 = vadd.f32 1.0, %v982_v4  ;;  %v902_v12 = vpop.f32.mrb[12].mxu0  ;;  %v431_v63 = vadd.f32 %v1370_v3, %v91_v49  ;;  %v789_v1 = vmul.f32 -1.442695, %v331_v48 }
 0x102   :  { %v986_v13 = vpop.eup %985  ;;  %1005 = vrcp.f32 %v605_v5  ;;  %v587_v14 = vadd.f32 1.0, %v984_v8  ;;  %v1381_v17 = vpop.f32.mrb[13].mxu0  ;;  %v346_v58 = vadd.f32 %v902_v12, %v74_v44  ;;  %v810_v5 = vmul.f32 -1.442695, %v436_v52  ;;  %v96_v44 = vld [vmem:[%s1634_s2 + $0x118] sm:$0xff] }
 0x103   :  { %v1383_v18 = vpop.f32.mrb[12].mxu1  ;;  %v988_v19 = vpop.eup %987  ;;  %1007 = vrcp.f32 %v588_v9  ;;  %v608_v20 = vadd.f32 1.0, %v986_v13  ;;  %v341_v2 = vadd.f32 %v1381_v17, %v73_v53  ;;  %v809_v10 = vmul.f32 -1.442695, %v431_v63  ;;  %v98_v63 = vld [vmem:[%s1634_s2 + $0x128] sm:$0xf] }
 0x104   :  { %v1388_v23 = vpop.f32.mrb[13].mxu1  ;;  %v990_v24 = vpop.eup %989  ;;  %1009 = vrcp.f32 %v587_v14  ;;  %v607_v25 = vadd.f32 1.0, %v988_v19  ;;  %v792_v7 = vmul.f32 -1.442695, %v346_v58  ;;  %v446_v37 = vadd.f32 %v1383_v18, %v94_v27  ;;  %v78_v18 = vld [vmem:[%s1634_s2 + $0x88] sm:$0xff] }
 0x105   :  { %v992_v29 = vpop.eup %991  ;;  %1011 = vrcp.f32 %v608_v20  ;;  %v590_v30 = vadd.f32 1.0, %v990_v24  ;;  %v1396_v34 = vpop.f32.mrb[14].mxu0  ;;  %v791_v12 = vmul.f32 -1.442695, %v341_v2  ;;  %v441_v48 = vadd.f32 %v1388_v23, %v93_v33  ;;  %v77_v23 = vld [vmem:[%s1634_s2 + $0x80] sm:$0xff]  ;;  %v80_v2 = vld [vmem:[%s1634_s2 + $0x98] sm:$0xff] }
 0x106   :  { %v994_v35 = vpop.eup %993  ;;  %699 = vst.msk [vmem:[%s1635_s3 + $0x8] sm:$0xff] %vm697_vm1, %v992_v29  ;;  %1013 = vrcp.f32 %v607_v25  ;;  %v1405_v39 = vpop.f32.mrb[15].mxu0 }
 0x107   :  { %v1407_v40 = vpop.f32.mrb[14].mxu1  ;;  %v996_v41 = vpop.eup %995  ;;  %698 = vst.msk [vmem:[%s1635_s3] sm:$0xff] %vm697_vm1, %v994_v35  ;;  %1015 = vrcp.f32 %v590_v30  ;;  %v76_v30 = vld [vmem:[%s1634_s2 + $0x78] sm:$0xff] }
 0x108   :  { %v1417_v45 = vpop.f32.mrb[15].mxu1  ;;  %v998_v46 = vpop.eup %997  ;;  %719 = vst.msk [vmem:[%s1635_s3 + $0xa8] sm:$0xff] %vm697_vm1, %v996_v41  ;;  %1017 = vpow2.f32 %v785_v26  ;;  %v356_v43 = vadd.f32 %v1396_v34, %v76_v30  ;;  %v95_v34 = vld [vmem:[%s1634_s2 + $0x110] sm:$0xff] }
 0x109   :  { %v1000_v50 = vpop.eup %999  ;;  %718 = vst.msk [vmem:[%s1635_s3 + $0xa0] sm:$0xff] %vm697_vm1, %v998_v46  ;;  %1019 = vpow2.f32 %v806_v31  ;;  %v1435_v54 = vpop.f32.mrb[16].mxu0 }
 0x10a   :  { %v1437_v55 = vpop.f32.mrb[16].mxu1  ;;  %v1002_v56 = vpop.eup %1001  ;;  %701 = vst.msk [vmem:[%s1635_s3 + $0x18] sm:$0xff] %vm697_vm1, %v1000_v50  ;;  %1021 = vpow2.f32 %v788_v36 }
 0x10b   :  { %v1443_v59 = vpop.f32.mrb[17].mxu0  ;;  %v1445_v60 = vpop.f32.mrb[17].mxu1  ;;  %700 = vst.msk [vmem:[%s1635_s3 + $0x10] sm:$0xff] %vm697_vm1, %v1002_v56  ;;  %1023 = vpow2.f32 %v805_v42  ;;  %v812_v56 = vmul.f32 -1.442695, %v446_v37 }
 0x10c   :  { %v1004_v61 = vpop.eup %1003  ;;  %1025 = vpow2.f32 %v787_v47 }
 0x10d   :  { %v1006_v0 = vpop.eup %1005  ;;  %721 = vst.msk [vmem:[%s1635_s3 + $0xb8] sm:$0xff] %vm697_vm1, %v1004_v61  ;;  %1027 = vpow2.f32 %v808_v51  ;;  %v1461_v6 = vpop.f32.mrb[18].mxu0  ;;  %v351_v51 = vadd.f32 %v1405_v39, %v75_v38  ;;  %v366_v39 = vadd.f32 %v1435_v54, %v78_v18 }
 0x10e   :  { %v1008_v4 = vpop.eup %1007  ;;  %720 = vst.msk [vmem:[%s1635_s3 + $0xb0] sm:$0xff] %vm697_vm1, %v1006_v0  ;;  %1029 = vpow2.f32 %v790_v57  ;;  %v1467_v8 = vpop.f32.mrb[19].mxu0  ;;  %v456_v57 = vadd.f32 %v1407_v40, %v96_v44  ;;  %v811_v40 = vmul.f32 -1.442695, %v441_v48 }
 0x10f   :  { %v1010_v3 = vpop.eup %1009  ;;  %703 = vst.msk [vmem:[%s1635_s3 + $0x28] sm:$0xff] %vm697_vm1, %v1008_v4  ;;  %1031 = vpow2.f32 %v807_v62  ;;  %v794_v62 = vmul.f32 -1.442695, %v356_v43  ;;  %v793_v54 = vmul.f32 -1.442695, %v351_v51 }
 0x110   :  { %v1012_v9 = vpop.eup %1011  ;;  %702 = vst.msk [vmem:[%s1635_s3 + $0x20] sm:$0xff] %vm697_vm1, %v1010_v3  ;;  %1033 = vpow2.f32 %v789_v1  ;;  %v451_v1 = vadd.f32 %v1417_v45, %v95_v34  ;;  %v97_v3 = vld [vmem:[%s1634_s2 + $0x120] sm:$0xff]  ;;  %v814_v45 = vmul.f32 -1.442695, %v456_v57 }
 0x111   :  { %v1014_v11 = vpop.eup %1013  ;;  %723 = vst.msk [vmem:[%s1635_s3 + $0xc8] sm:$0xff] %vm697_vm1, %v1012_v9  ;;  %1035 = vpow2.f32 %v810_v5  ;;  %v361_v5 = vadd.f32 %v1443_v59, %v77_v23  ;;  %v466_v9 = vadd.f32 %v1437_v55, %v98_v63  ;;  %v796_v59 = vmul.f32 -1.442695, %v366_v39 }
 0x112   :  { %v1016_v13 = vpop.eup %1015  ;;  %722 = vst.msk [vmem:[%s1635_s3 + $0xc0] sm:$0xff] %vm697_vm1, %v1014_v11  ;;  %1037 = vpow2.f32 %v792_v7  ;;  %v813_v55 = vmul.f32 -1.442695, %v451_v1 }
 0x113   :  { %v1018_v14 = vpop.eup %1017  ;;  %705 = vst.msk [vmem:[%s1635_s3 + $0x38] sm:$0xff] %vm697_vm1, %v1016_v13  ;;  %1039 = vpow2.f32 %v809_v10  ;;  %v79_v10 = vld [vmem:[%s1634_s2 + $0x90] sm:$0xff] }
 0x114   :  { %v1020_v15 = vpop.eup %1019  ;;  %v589_v16 = vadd.f32 1.0, %v1018_v14  ;;  %1041 = vpow2.f32 %v791_v12  ;;  %v376_v12 = vadd.f32 %v1461_v6, %v80_v2  ;;  %v461_v14 = vadd.f32 %v1445_v60, %v97_v3 }
 0x115   :  { %v1022_v17 = vpop.eup %1021  ;;  %v610_v19 = vadd.f32 1.0, %v1020_v15  ;;  %v371_v6 = vadd.f32 %v1467_v8, %v79_v10 }
 0x116   :  { %v1024_v20 = vpop.eup %1023  ;;  %1043 = vrcp.f32 %v589_v16  ;;  %v592_v21 = vadd.f32 1.0, %v1022_v17  ;;  %v795_v16 = vmul.f32 -1.442695, %v361_v5  ;;  %v798_v60 = vmul.f32 -1.442695, %v376_v12 }
 0x117   :  { %v1026_v22 = vpop.eup %1025  ;;  %1045 = vrcp.f32 %v610_v19  ;;  %v609_v24 = vadd.f32 1.0, %v1024_v20  ;;  %v816_v19 = vmul.f32 -1.442695, %v466_v9  ;;  %v815_v8 = vmul.f32 -1.442695, %v461_v14 }
 0x118   :  { %v1028_v25 = vpop.eup %1027  ;;  %1047 = vrcp.f32 %v592_v21  ;;  %v591_v26 = vadd.f32 1.0, %v1026_v22 }
 0x119   :  { %v1030_v28 = vpop.eup %1029  ;;  %1049 = vrcp.f32 %v609_v24  ;;  %v612_v29 = vadd.f32 1.0, %v1028_v25  ;;  %v797_v24 = vmul.f32 -1.442695, %v371_v6 }
 0x11a   :  { %v1032_v31 = vpop.eup %1031  ;;  %1051 = vrcp.f32 %v591_v26  ;;  %v594_v32 = vadd.f32 1.0, %v1030_v28 }
 0x11b   :  { %v1034_v35 = vpop.eup %1033  ;;  %1053 = vrcp.f32 %v612_v29  ;;  %v611_v36 = vadd.f32 1.0, %v1032_v31 }
 0x11c   :  { %v1036_v41 = vpop.eup %1035  ;;  %1055 = vrcp.f32 %v594_v32  ;;  %v593_v42 = vadd.f32 1.0, %v1034_v35 }
 0x11d   :  { %v1038_v46 = vpop.eup %1037  ;;  %1057 = vrcp.f32 %v611_v36  ;;  %v614_v47 = vadd.f32 1.0, %v1036_v41 }
 0x11e   :  { %v1040_v49 = vpop.eup %1039  ;;  %1059 = vrcp.f32 %v593_v42  ;;  %v596_v50 = vadd.f32 1.0, %v1038_v46 }
 0x11f   :  { %v1042_v52 = vpop.eup %1041  ;;  %1061 = vrcp.f32 %v614_v47  ;;  %v613_v53 = vadd.f32 1.0, %v1040_v49 }
 0x120   :  { %v1044_v58 = vpop.eup %1043  ;;  %1063 = vrcp.f32 %v596_v50  ;;  %v595_v61 = vadd.f32 1.0, %v1042_v52 }
 0x121   :  { %v1046_v0 = vpop.eup %1045  ;;  %704 = vst.msk [vmem:[%s1635_s3 + $0x30] sm:$0xff] %vm697_vm1, %v1044_v58  ;;  %1065 = vrcp.f32 %v613_v53 }
 0x122   :  { %v1048_v4 = vpop.eup %1047  ;;  %725 = vst.msk [vmem:[%s1635_s3 + $0xd8] sm:$0xff] %vm697_vm1, %v1046_v0  ;;  %1067 = vrcp.f32 %v595_v61 }
 0x123   :  { %v1050_v7 = vpop.eup %1049  ;;  %707 = vst.msk [vmem:[%s1635_s3 + $0x48] sm:$0xff] %vm697_vm1, %v1048_v4  ;;  %1069 = vpow2.f32 %v812_v56 }
 0x124   :  { %v1052_v11 = vpop.eup %1051  ;;  %724 = vst.msk [vmem:[%s1635_s3 + $0xd0] sm:$0xff] %vm697_vm1, %v1050_v7  ;;  %1071 = vpow2.f32 %v794_v62 }
 0x125   :  { %v1054_v13 = vpop.eup %1053  ;;  %706 = vst.msk [vmem:[%s1635_s3 + $0x40] sm:$0xff] %vm697_vm1, %v1052_v11  ;;  %1073 = vpow2.f32 %v811_v40 }
 0x126   :  { %v1056_v15 = vpop.eup %1055  ;;  %727 = vst.msk [vmem:[%s1635_s3 + $0xe8] sm:$0xff] %vm697_vm1, %v1054_v13  ;;  %1075 = vpow2.f32 %v793_v54 }
 0x127   :  { %v1058_v17 = vpop.eup %1057  ;;  %709 = vst.msk [vmem:[%s1635_s3 + $0x58] sm:$0xff] %vm697_vm1, %v1056_v15  ;;  %1077 = vpow2.f32 %v814_v45 }
 0x128   :  { %v1060_v20 = vpop.eup %1059  ;;  %726 = vst.msk [vmem:[%s1635_s3 + $0xe0] sm:$0xff] %vm697_vm1, %v1058_v17  ;;  %1079 = vpow2.f32 %v796_v59 }
 0x129   :  { %v1062_v21 = vpop.eup %1061  ;;  %708 = vst.msk [vmem:[%s1635_s3 + $0x50] sm:$0xff] %vm697_vm1, %v1060_v20  ;;  %1081 = vpow2.f32 %v813_v55 }
 0x12a   :  { %v1064_v22 = vpop.eup %1063  ;;  %729 = vst.msk [vmem:[%s1635_s3 + $0xf8] sm:$0xff] %vm697_vm1, %v1062_v21  ;;  %1083 = vpow2.f32 %v795_v16 }
 0x12b   :  { %v1066_v25 = vpop.eup %1065  ;;  %711 = vst.msk [vmem:[%s1635_s3 + $0x68] sm:$0xff] %vm697_vm1, %v1064_v22  ;;  %1085 = vpow2.f32 %v816_v19 }
 0x12c   :  { %v1068_v26 = vpop.eup %1067  ;;  %728 = vst.msk [vmem:[%s1635_s3 + $0xf0] sm:$0xff] %vm697_vm1, %v1066_v25  ;;  %1087 = vpow2.f32 %v798_v60 }
 0x12d   :  { %v1070_v27 = vpop.eup %1069  ;;  %710 = vst.msk [vmem:[%s1635_s3 + $0x60] sm:$0xff] %vm697_vm1, %v1068_v26  ;;  %1089 = vpow2.f32 %v815_v8 }
 0x12e   :  { %v1072_v28 = vpop.eup %1071  ;;  %v616_v29 = vadd.f32 1.0, %v1070_v27  ;;  %1091 = vpow2.f32 %v797_v24 }
 0x12f   :  { %v1074_v30 = vpop.eup %1073  ;;  %v598_v31 = vadd.f32 1.0, %v1072_v28 }
 0x130   :  { %v1076_v32 = vpop.eup %1075  ;;  %1093 = vrcp.f32 %v616_v29  ;;  %v615_v33 = vadd.f32 1.0, %v1074_v30 }
 0x131   :  { %v1078_v35 = vpop.eup %1077  ;;  %1095 = vrcp.f32 %v598_v31  ;;  %v597_v36 = vadd.f32 1.0, %v1076_v32 }
 0x132   :  { %v1080_v37 = vpop.eup %1079  ;;  %1097 = vrcp.f32 %v615_v33  ;;  %v618_v38 = vadd.f32 1.0, %v1078_v35 }
 0x133   :  { %v1082_v41 = vpop.eup %1081  ;;  %1099 = vrcp.f32 %v597_v36  ;;  %v600_v42 = vadd.f32 1.0, %v1080_v37 }
 0x134   :  { %v1084_v43 = vpop.eup %1083  ;;  %1101 = vrcp.f32 %v618_v38  ;;  %v617_v44 = vadd.f32 1.0, %v1082_v41 }
 0x135   :  { %v1086_v46 = vpop.eup %1085  ;;  %1103 = vrcp.f32 %v600_v42  ;;  %v599_v47 = vadd.f32 1.0, %v1084_v43 }
 0x136   :  { %v1088_v48 = vpop.eup %1087  ;;  %1105 = vrcp.f32 %v617_v44  ;;  %v620_v18 = vadd.f32 1.0, %v1086_v46 }
 0x137   :  { %v1090_v49 = vpop.eup %1089  ;;  %1107 = vrcp.f32 %v599_v47  ;;  %v602_v50 = vadd.f32 1.0, %v1088_v48 }
 0x138   :  { %v1092_v51 = vpop.eup %1091  ;;  %1109 = vrcp.f32 %v620_v18  ;;  %v619_v34 = vadd.f32 1.0, %v1090_v49 }
 0x139   :  { %1111 = vrcp.f32 %v602_v50  ;;  %v601_v52 = vadd.f32 1.0, %v1092_v51 }
 0x13a   :  { %v1094_v53 = vpop.eup %1093  ;;  %1113 = vrcp.f32 %v619_v34 }
 0x13b   :  { %v1096_v56 = vpop.eup %1095  ;;  %731 = vst.msk [vmem:[%s1635_s3 + $0x108] sm:$0xff] %vm697_vm1, %v1094_v53  ;;  %1115 = vrcp.f32 %v601_v52 }
 0x13c   :  { %v1098_v57 = vpop.eup %1097  ;;  %713 = vst.msk [vmem:[%s1635_s3 + $0x78] sm:$0xff] %vm697_vm1, %v1096_v56 }
 0x13d   :  { %v1100_v23 = vpop.eup %1099  ;;  %730 = vst.msk [vmem:[%s1635_s3 + $0x100] sm:$0xff] %vm697_vm1, %v1098_v57 }
 0x13e   :  { %v1102_v58 = vpop.eup %1101  ;;  %712 = vst.msk [vmem:[%s1635_s3 + $0x70] sm:$0xff] %vm697_vm1, %v1100_v23 }
 0x13f   :  { %v1104_v61 = vpop.eup %1103  ;;  %733 = vst.msk [vmem:[%s1635_s3 + $0x118] sm:$0xff] %vm697_vm1, %v1102_v58 }
 0x140   :  { %v1106_v62 = vpop.eup %1105  ;;  %715 = vst.msk [vmem:[%s1635_s3 + $0x88] sm:$0xff] %vm697_vm1, %v1104_v61 }
 0x141   :  { %v1108_v39 = vpop.eup %1107  ;;  %732 = vst.msk [vmem:[%s1635_s3 + $0x110] sm:$0xff] %vm697_vm1, %v1106_v62 }
 0x142   :  { %v1110_v63 = vpop.eup %1109  ;;  %714 = vst.msk [vmem:[%s1635_s3 + $0x80] sm:$0xff] %vm697_vm1, %v1108_v39 }
 0x143   :  { %v1112_v0 = vpop.eup %1111  ;;  %736 = vst.msk [vmem:[%s1635_s3 + $0x128] sm:$0xf] %vm735_vm2, %v1110_v63 }
 0x144   :  { %v1114_v40 = vpop.eup %1113  ;;  %717 = vst.msk [vmem:[%s1635_s3 + $0x98] sm:$0xff] %vm697_vm1, %v1112_v0 }
 0x145   :  { %v1116_v1 = vpop.eup %1115  ;;  %734 = vst.msk [vmem:[%s1635_s3 + $0x120] sm:$0xff] %vm697_vm1, %v1114_v40 }
 0x146   :  { %716 = vst.msk [vmem:[%s1635_s3 + $0x90] sm:$0xff] %vm697_vm1, %v1116_v1 }

</bundles_post_ra>
